<compile_context>
chip_gen: v6e
topology: v6e:2x2x1
jax: 0.10.0
libtpu: 0.0.40
codegen_flags: <defaults>
</compile_context>

<pallas_src>
import functools

import jax
import jax.numpy as jnp
from jax.experimental import pallas as pl
from jax.experimental.pallas import tpu as pltpu

NUM_CAMS = 5
NUM_SEG_CLASSES = 19    # get_score references class indices 0..18
NUM_OUT_CLASSES = 6

_TILE_CANDIDATES = (8192, 4096, 2048, 1024, 512, 256, 128)


def _pick_tile(n, min_grid=1):
    """Largest lane tile (multiple of 128) dividing n with >= min_grid steps.

    Falls back to the smallest dividing candidate (most grid steps) when no
    candidate yields min_grid steps.  n must be a multiple of 128 (pad in glue).
    """
    divisors = [c for c in _TILE_CANDIDATES if n % c == 0]
    if not divisors:
        raise ValueError(f"size {n} must be a multiple of 128 (pad in the glue)")
    for c in divisors:                 # descending
        if n // c >= min_grid:
            return c
    return divisors[-1]


def _vmem_limit_bytes():
    """Generation-aware VMEM scoped limit (headroom under physical capacity)."""
    try:
        phys = int(pltpu.get_tpu_info().vmem_capacity_bytes)
    except Exception:
        return 48 * 1024 * 1024        # conservative: fits v7x's 64 MiB physical
    return int(min(phys * 3 // 4, 100 * 1024 * 1024))


# -------------------- kernel 1: softmax over classes + regroup ---------------
def _score_kernel(x_ref, o_ref):
    x = x_ref[0]                                          # (19, TILE_PIX) f32
    m = jnp.max(x, axis=0, keepdims=True)                 # (1, TILE_PIX)
    e = jnp.exp(x - m)
    inv = pl.reciprocal(jnp.sum(e, axis=0, keepdims=True), approx=True)
    p = e * inv                                           # softmax over classes
    dt = o_ref.dtype
    # Direct row stores (no concatenate / sublane shuffle through the XLU).
    o_ref[0:1, :] = jnp.sum(p[0:11], axis=0, keepdims=True).astype(dt)   # 0..10
    o_ref[1:2, :] = p[18:19].astype(dt)                                  # 18
    o_ref[2:3, :] = (p[13:14] + p[14:15] + p[15:16] + p[16:17]).astype(dt)
    o_ref[3:4, :] = p[11:12].astype(dt)                                  # 11
    o_ref[4:5, :] = p[12:13].astype(dt)                                  # 12
    o_ref[5:6, :] = p[17:18].astype(dt)                                  # 17
    # TODO(synk): on v6e/v7x compute exp in bf16 (EUP-bound kernel); kept f32
    # here so the same code also lowers cleanly on v5e (no bf16 EUP/VPU).


def get_class_scores(seg_nchw, hw_pad):
    """(cams,19,H,W) -> lane-dense (6, cams*hw_pad) bf16 class-score slab."""
    n, c, h, w = seg_nchw.shape
    hw = h * w
    x = seg_nchw.reshape(n, c, hw).astype(jnp.float32)    # contiguous, no transpose
    if hw_pad != hw:
        x = jnp.pad(x, ((0, 0), (0, 0), (0, hw_pad - hw)))
    tile = _pick_tile(hw_pad, min_grid=1)
    pix_blocks = hw_pad // tile
    out = pl.pallas_call(
        _score_kernel,
        grid=(n, pix_blocks),
        in_specs=[pl.BlockSpec((1, c, tile), lambda cam, p: (cam, 0, p))],
        out_specs=pl.BlockSpec((NUM_OUT_CLASSES, tile),
                               lambda cam, p: (0, cam * pix_blocks + p)),
        out_shape=jax.ShapeDtypeStruct((NUM_OUT_CLASSES, n * hw_pad), jnp.bfloat16),
        compiler_params=pltpu.CompilerParams(
            dimension_semantics=("parallel", "parallel")),
    )(x)
    return out                                            # (6, cams*hw_pad)


# -------------------- kernel 2: project points + paint scores ----------------
def _paint_kernel(hom_ref, dmat_ref, scores_ref, o_ref, *, h, w, hw_pad):
    t = hom_ref.shape[1]                                  # points on lanes
    hom = hom_ref[...]                                    # (4, T) f32
    rows = [hom[j:j + 1, :] for j in range(4)]            # (1, T) lane-dense vregs

    # One pixel-index iota, reused by all cameras (per-camera slab stride).
    row_ids = jax.lax.broadcasted_iota(jnp.int32, (hw_pad, t), 0)
    one = jnp.bfloat16(1.0)
    zero = jnp.bfloat16(0.0)

    gathered = jnp.zeros((NUM_OUT_CLASSES, t), jnp.float32)
    masks = []
    for cam in range(NUM_CAMS):
        # Exact f32 VPU projection: proj[k] = sum_j hom[j,:] * D[cam, k, j]
        # (kept scalar-broadcast so floor()/boundary compares stay f32-exact).
        proj = []
        for k in range(4):
            s = rows[0] * dmat_ref[cam * 16 + 4 * k + 0]
            for j in range(1, 4):
                s = s + rows[j] * dmat_ref[cam * 16 + 4 * k + j]
            proj.append(s)
        p2 = proj[2]
        p2s = jnp.where(p2 == 0.0, 1e-12, p2)             # guard divide-by-zero
        inv = pl.reciprocal(p2s, approx=False)            # exact: floor() is boundary-sensitive
        u = proj[0] * inv                                 # image x
        v = proj[1] * inv                                 # image y
        cz = proj[3]                                      # camera-frame z (Tr row 2)
        on = ((u > 0.0) & (u < float(w)) &
              (v > 0.0) & (v < float(h)) & (cz > 0.0))    # (1, T) bool
        xi = jnp.floor(jnp.clip(u, 0.0, float(w - 1))).astype(jnp.int32)
        yi = jnp.floor(jnp.clip(v, 0.0, float(h - 1))).astype(jnp.int32)
        flat = yi * w + xi                                # (1, T) per-camera pixel idx
        # On-image mask folded straight into a bf16 one-hot (single select,
        # no f32 intermediate); padded slab columns can never match.
        onehot = jnp.where((row_ids == flat) & on, one, zero)   # (hw_pad, T) bf16
        # Per-camera MXU gather: (6, hw_pad) bf16 @ (hw_pad, T) bf16 -> (6, T) f32.
        gathered = gathered + jnp.dot(
            scores_ref[:, cam * hw_pad:(cam + 1) * hw_pad], onehot,
            preferred_element_type=jnp.float32)
        masks.append(on)

    factor = jnp.ones((1, t), jnp.float32)
    for a, b in ((0, 1), (0, 2), (1, 3), (2, 4)):         # overlap halving
        factor = factor * jnp.where(masks[a] & masks[b], 0.5, 1.0)
    o_ref[...] = gathered * factor


def _combined_mats(proj_mats):
    """Per camera: proj = P@R0 @ [Tr[:3]@hom ; 1]  ->  C @ hom ; 4th row = Tr[2]."""
    tr = jnp.stack(proj_mats[0:5]).astype(jnp.float32)    # (5,4,4)
    pm = jnp.stack(proj_mats[5:10]).astype(jnp.float32)   # (5,3,4)
    r0 = proj_mats[10].astype(jnp.float32)                # (4,4)
    dmats = []
    for c in range(NUM_CAMS):
        a = pm[c] @ r0                                    # (3,4)
        bmat = a[:, :3] @ tr[c][:3, :]                    # (3,4)
        cmat = bmat.at[:, 3].add(a[:, 3])                 # absorbs homogeneous 1
        dmats.append(jnp.concatenate([cmat, tr[c][2:3, :]], axis=0))  # (4,4)
    return jnp.stack(dmats)                               # (5,4,4)


def paint_points(scores_lane, lidar_raw, proj_mats, h, w, hw_pad):
    n_pts = lidar_raw.shape[0]
    k = NUM_OUT_CLASSES
    n_pad = max(128, ((n_pts + 127) // 128) * 128)        # lane-pad the point count
    dflat = _combined_mats(proj_mats).reshape(-1)         # (80,) f32 -> SMEM

    hom_t = jnp.concatenate(
        [jnp.transpose(lidar_raw[:, :3]).astype(jnp.float32),
         jnp.ones((1, n_pts), jnp.float32)], axis=0)      # (4, N): points on lanes
    if n_pad != n_pts:
        hom_t = jnp.pad(hom_t, ((0, 0), (0, n_pad - n_pts)))  # padded cols -> never on-image

    t = _pick_tile(n_pad, min_grid=2)                     # >=2 grid steps when possible (megacore)
    kernel = functools.partial(_paint_kernel, h=h, w=w, hw_pad=hw_pad)
    slab_shape = (k, NUM_CAMS * hw_pad)

    def run(slab_spec):
        return pl.pallas_call(
            kernel,
            grid=(n_pad // t,),
            in_specs=[pl.BlockSpec((4, t), lambda i: (0, i)),
                      pl.BlockSpec(memory_space=pltpu.MemorySpace.SMEM),
                      slab_spec],
            out_specs=pl.BlockSpec((k, t), lambda i: (0, i)),
            out_shape=jax.ShapeDtypeStruct((k, n_pad), jnp.float32),
            compiler_params=pltpu.CompilerParams(
                dimension_semantics=("parallel",),
                vmem_limit_bytes=_vmem_limit_bytes()),
        )(hom_t, dflat, scores_lane)

    try:
        # Score slab's block index never changes -> single-buffer it (halves the
        # largest VMEM allocation; matters once H*W grows, esp. on v7x 64 MiB).
        painted = run(pl.BlockSpec(slab_shape, lambda i: (0, 0),
                                   pipeline_mode=pl.Buffered(1)))
    except Exception:
        painted = run(pl.BlockSpec(slab_shape, lambda i: (0, 0)))

    painted = painted[:, :n_pts]                          # drop lane padding
    augmented = jnp.concatenate(
        [lidar_raw[:, :5].astype(jnp.float32), jnp.transpose(painted)], axis=1)  # (N, 11)
    # TODO(synk): cam_sync=True path compacts points with a boolean mask
    # (data-dependent output shape) -- not expressible as a fixed-shape kernel;
    # default cam_sync=False (no compaction) is implemented here.
    # TODO(synk): at production image sizes (KITTI ~370x1240) replace the
    # O(T x H*W) one-hot matmuls with a two-pass scalar-prefetch / DMA-row
    # gather against an HBM-resident slab (memory_space=pl.ANY), and fold the
    # projection into one small MXU matmul at that point.
    return augmented


def point_painter_forward(segmentation_results, lidar_raw, proj_mtx):
    _, _, h, w = segmentation_results.shape
    hw_pad = max(128, ((h * w + 127) // 128) * 128)       # lane-pad pixel count
    scores_lane = get_class_scores(segmentation_results, hw_pad)  # (6, 5*hw_pad) bf16
    return paint_points(scores_lane, lidar_raw, proj_mtx, h, w, hw_pad)   # (N, 11)


# -------------------- pure-JAX reference (for sanity check) ------------------
def reference_forward(seg_nchw, lidar_raw, proj_mats):
    n, _, h, w = seg_nchw.shape
    p = jax.nn.softmax(jnp.transpose(seg_nchw, (0, 2, 3, 1)), axis=-1)
    cs = jnp.stack([
        p[..., 0:11].sum(-1),
        p[..., 18],
        p[..., 13] + p[..., 14] + p[..., 15] + p[..., 16],
        p[..., 11],
        p[..., 12],
        p[..., 17],
    ], axis=-1)                                           # (5,H,W,6)
    scores_flat = cs.reshape(n, h * w, NUM_OUT_CLASSES)

    dm = _combined_mats(proj_mats)
    npts = lidar_raw.shape[0]
    cols = [lidar_raw[:, 0:1].astype(jnp.float32),
            lidar_raw[:, 1:2].astype(jnp.float32),
            lidar_raw[:, 2:3].astype(jnp.float32),
            jnp.ones((npts, 1), jnp.float32)]
    acc = jnp.zeros((npts, NUM_OUT_CLASSES), jnp.float32)
    masks = []
    for cam in range(n):
        proj = []
        for k in range(4):
            s = cols[0] * dm[cam, k, 0]
            for j in range(1, 4):
                s = s + cols[j] * dm[cam, k, j]
            proj.append(s)
        p2 = proj[2]
        p2s = jnp.where(p2 == 0.0, 1e-12, p2)
        inv = 1.0 / p2s
        u = proj[0] * inv
        v = proj[1] * inv
        cz = proj[3]
        on = (u > 0.0) & (u < float(w)) & (v > 0.0) & (v < float(h)) & (cz > 0.0)
        xi = jnp.floor(jnp.clip(u, 0.0, float(w - 1))).astype(jnp.int32)
        yi = jnp.floor(jnp.clip(v, 0.0, float(h - 1))).astype(jnp.int32)
        flat = (yi * w + xi)[:, 0]
        gathered = scores_flat[cam][flat]
        acc = acc + on.astype(jnp.float32) * gathered
        masks.append(on)
    factor = jnp.ones((npts, 1), jnp.float32)
    for a, b in ((0, 1), (0, 2), (1, 3), (2, 4)):
        factor = factor * jnp.where(masks[a] & masks[b], 0.5, 1.0)
    return jnp.concatenate([lidar_raw[:, :5], acc * factor], axis=1)


if __name__ == "__main__":
    key = jax.random.PRNGKey(0)
    k1, k2, k3, k4 = jax.random.split(key, 4)

    H = W = 16
    seg = jax.random.normal(k1, (NUM_CAMS, NUM_SEG_CLASSES, H, W), jnp.float32)

    n_pts = 256
    xy = jax.random.uniform(k2, (n_pts, 2), jnp.float32, -2.0, 2.0)
    z = jax.random.uniform(k3, (n_pts, 1), jnp.float32, 3.0, 10.0)
    extra = jax.random.uniform(k4, (n_pts, 2), jnp.float32, 0.0, 1.0)
    lidar_raw = jnp.concatenate([xy, z, extra], axis=1)   # (256, 5)

    # proj_mtx: [0..4] Tr_velo_to_cam (4,4), [5..9] P (3,4), [10] R0_rect (4,4)
    proj_mats = []
    for c in range(NUM_CAMS):
        tr = jnp.eye(4, dtype=jnp.float32)
        tr = tr.at[0, 3].set(0.1 * (c - 2)).at[1, 3].set(-0.05 * (c - 2))
        proj_mats.append(tr)
    for c in range(NUM_CAMS):
        f = 8.0 + 0.25 * c
        proj_mats.append(jnp.array([[f, 0.0, 8.0, 0.0],
                                    [0.0, f, 8.0, 0.0],
                                    [0.0, 0.0, 1.0, 0.0]], jnp.float32))
    proj_mats.append(jnp.eye(4, dtype=jnp.float32))

    out = point_painter_forward(seg, lidar_raw, proj_mats)
    out = jax.block_until_ready(out)

    ref = reference_forward(seg, lidar_raw, proj_mats)
    assert out.shape == (n_pts, 5 + NUM_OUT_CLASSES)
    assert bool(jnp.all(jnp.isfinite(out)))
    assert bool(jnp.allclose(out, ref, atol=5e-2, rtol=5e-2))
    print("KERNEL_OK")
</pallas_src>

<mosaic_0001>
module attributes {stable_mosaic.version = 11 : i64} {
  func.func @_score_kernel(%arg0: i32, %arg1: i32, %arg2: memref<1x19x256xf32, #tpu.memory_space<vmem>>, %arg3: memref<6x256xbf16, #tpu.memory_space<vmem>>) attributes {dimension_semantics = [#tpu.dimension_semantics<parallel>, #tpu.dimension_semantics<parallel>], iteration_bounds = array<i64: 5, 1>, scalar_prefetch = 0 : i64, scratch_operands = 0 : i64, tpu.core_type = #tpu.core_type<tc>, window_params = [{transform_indices = @transform_0, window_bounds = array<i64: 1, 19, 256>}, {transform_indices = @transform_1, window_bounds = array<i64: 6, 256>}]} {
    %c0 = arith.constant 0 : index
    %c0_0 = arith.constant 0 : index
    %c0_1 = arith.constant 0 : index
    %0 = vector.load %arg2[%c0, %c0_0, %c0_1] : memref<1x19x256xf32, #tpu.memory_space<vmem>>, vector<1x19x256xf32>
    %1 = vector.shape_cast %0 : vector<1x19x256xf32> to vector<19x256xf32>
    %cst = arith.constant dense<0xFF800000> : vector<256xf32>
    %2 = vector.multi_reduction <maximumf>, %1, %cst [0] : vector<19x256xf32> to vector<256xf32>
    %3 = vector.shape_cast %2 : vector<256xf32> to vector<1x256xf32>
    %4 = vector.broadcast %3 : vector<1x256xf32> to vector<19x256xf32>
    %5 = arith.subf %1, %4 : vector<19x256xf32>
    %6 = math.exp %5 : vector<19x256xf32>
    %cst_2 = arith.constant dense<0.000000e+00> : vector<256xf32>
    %7 = vector.multi_reduction <add>, %6, %cst_2 [0] : vector<19x256xf32> to vector<256xf32>
    %8 = vector.shape_cast %7 : vector<256xf32> to vector<1x256xf32>
    %9 = tpu.reciprocal %8 {approx = true} : vector<1x256xf32> -> vector<1x256xf32>
    %10 = vector.broadcast %9 : vector<1x256xf32> to vector<19x256xf32>
    %11 = arith.mulf %6, %10 : vector<19x256xf32>
    %12 = vector.extract_strided_slice %11 {offsets = [0, 0], sizes = [11, 256], strides = [1, 1]} : vector<19x256xf32> to vector<11x256xf32>
    %cst_3 = arith.constant dense<0.000000e+00> : vector<256xf32>
    %13 = vector.multi_reduction <add>, %12, %cst_3 [0] : vector<11x256xf32> to vector<256xf32>
    %14 = vector.shape_cast %13 : vector<256xf32> to vector<1x256xf32>
    %15 = arith.truncf %14 : vector<1x256xf32> to vector<1x256xbf16>
    %c0_4 = arith.constant 0 : index
    %c0_5 = arith.constant 0 : index
    %16 = vector.load %arg3[%c0_4, %c0_5] : memref<6x256xbf16, #tpu.memory_space<vmem>>, vector<1x256xbf16>
    tpu.vector_store %arg3[%c0_4, %c0_5], %15 {strides = array<i32>} : memref<6x256xbf16, #tpu.memory_space<vmem>>, vector<1x256xbf16>,
    %17 = vector.extract_strided_slice %11 {offsets = [18, 0], sizes = [1, 256], strides = [1, 1]} : vector<19x256xf32> to vector<1x256xf32>
    %18 = arith.truncf %17 : vector<1x256xf32> to vector<1x256xbf16>
    %c1 = arith.constant 1 : index
    %c0_6 = arith.constant 0 : index
    %19 = vector.load %arg3[%c1, %c0_6] : memref<6x256xbf16, #tpu.memory_space<vmem>>, vector<1x256xbf16>
    tpu.vector_store %arg3[%c1, %c0_6], %18 {strides = array<i32>} : memref<6x256xbf16, #tpu.memory_space<vmem>>, vector<1x256xbf16>,
    %20 = vector.extract_strided_slice %11 {offsets = [13, 0], sizes = [1, 256], strides = [1, 1]} : vector<19x256xf32> to vector<1x256xf32>
    %21 = vector.extract_strided_slice %11 {offsets = [14, 0], sizes = [1, 256], strides = [1, 1]} : vector<19x256xf32> to vector<1x256xf32>
    %22 = arith.addf %20, %21 : vector<1x256xf32>
    %23 = vector.extract_strided_slice %11 {offsets = [15, 0], sizes = [1, 256], strides = [1, 1]} : vector<19x256xf32> to vector<1x256xf32>
    %24 = arith.addf %22, %23 : vector<1x256xf32>
    %25 = vector.extract_strided_slice %11 {offsets = [16, 0], sizes = [1, 256], strides = [1, 1]} : vector<19x256xf32> to vector<1x256xf32>
    %26 = arith.addf %24, %25 : vector<1x256xf32>
    %27 = arith.truncf %26 : vector<1x256xf32> to vector<1x256xbf16>
    %c2 = arith.constant 2 : index
    %c0_7 = arith.constant 0 : index
    %28 = vector.load %arg3[%c2, %c0_7] : memref<6x256xbf16, #tpu.memory_space<vmem>>, vector<1x256xbf16>
    tpu.vector_store %arg3[%c2, %c0_7], %27 {strides = array<i32>} : memref<6x256xbf16, #tpu.memory_space<vmem>>, vector<1x256xbf16>,
    %29 = vector.extract_strided_slice %11 {offsets = [11, 0], sizes = [1, 256], strides = [1, 1]} : vector<19x256xf32> to vector<1x256xf32>
    %30 = arith.truncf %29 : vector<1x256xf32> to vector<1x256xbf16>
    %c3 = arith.constant 3 : index
    %c0_8 = arith.constant 0 : index
    %31 = vector.load %arg3[%c3, %c0_8] : memref<6x256xbf16, #tpu.memory_space<vmem>>, vector<1x256xbf16>
    tpu.vector_store %arg3[%c3, %c0_8], %30 {strides = array<i32>} : memref<6x256xbf16, #tpu.memory_space<vmem>>, vector<1x256xbf16>,
    %32 = vector.extract_strided_slice %11 {offsets = [12, 0], sizes = [1, 256], strides = [1, 1]} : vector<19x256xf32> to vector<1x256xf32>
    %33 = arith.truncf %32 : vector<1x256xf32> to vector<1x256xbf16>
    %c4 = arith.constant 4 : index
    %c0_9 = arith.constant 0 : index
    %34 = vector.load %arg3[%c4, %c0_9] : memref<6x256xbf16, #tpu.memory_space<vmem>>, vector<1x256xbf16>
    tpu.vector_store %arg3[%c4, %c0_9], %33 {strides = array<i32>} : memref<6x256xbf16, #tpu.memory_space<vmem>>, vector<1x256xbf16>,
    %35 = vector.extract_strided_slice %11 {offsets = [17, 0], sizes = [1, 256], strides = [1, 1]} : vector<19x256xf32> to vector<1x256xf32>
    %36 = arith.truncf %35 : vector<1x256xf32> to vector<1x256xbf16>
    %c5 = arith.constant 5 : index
    %c0_10 = arith.constant 0 : index
    %37 = vector.load %arg3[%c5, %c0_10] : memref<6x256xbf16, #tpu.memory_space<vmem>>, vector<1x256xbf16>
    tpu.vector_store %arg3[%c5, %c0_10], %36 {strides = array<i32>} : memref<6x256xbf16, #tpu.memory_space<vmem>>, vector<1x256xbf16>,
    return
  }
  func.func @transform_0(%arg0: i32, %arg1: i32) -> (i32, i32, i32) {
    %c0_i32 = arith.constant 0 : i32
    %c0_i32_0 = arith.constant 0 : i32
    return %arg0, %c0_i32, %arg1 : i32, i32, i32
  }
  func.func @transform_1(%arg0: i32, %arg1: i32) -> (i32, i32) {
    %c1_i32 = arith.constant 1 : i32
    %0 = arith.muli %arg0, %c1_i32 : i32
    %1 = arith.addi %0, %arg1 : i32
    %c0_i32 = arith.constant 0 : i32
    %c0_i32_0 = arith.constant 0 : i32
    return %c0_i32, %1 : i32, i32
  }
}

</mosaic_0001>

<bundles_post_ra>
// kernel: tpu_custom_call.1
= control target key start
LH: loop header
LB: loop body
LE: loop exit
PB: predicated region body
PF: predicated region fallthrough
CT: control target
= control target key end

     0   :  { %6 = vsyncpa [#allocation3], 0  ;;  %s913_s0 = inlined_call_operand.hbm [shape: f32[5,19,256], index: 0, kind: input, shape index: {}]   ;;  %s914_s1 = inlined_call_operand.hbm [shape: bf16[6,1280], index: 1, kind: output, shape index: {}]  }
   0x1   :  { %8 = vsyncpa [#allocation3 + $0x1], 0 }
   0x2   :  { %9 = vsyncpa [#allocation4], 0 }
   0x3   :  { %11 = vsyncpa [#allocation4 + $0x1], 0  ;;  %s689_s6 = smov 0   ;;  %s691_s7 = smov 0  }
   0x4   :  { %s693_s8 = smov 0   ;;  %s695_s9 = smov 0  }
   0x5   :  { %s697_s10 = smov 0   ;;  %s699_s11 = smov 0  }
   0x6 LB: > { %s459_s12 = sadd.s32 4294967295, %s673_s11   ;;  %s460_s13 = sadd.s32 4294967294, %s673_s11   ;;  %s673_s11 = sphi %s699_s11, %s17_s11   ;;  %s669_s10 = sphi %s697_s10, %s940_s10   ;;  %s665_s9 = sphi %s695_s9, %s939_s9   ;;  %s661_s8 = sphi %s693_s8, %s938_s8   ;;  %s657_s7 = sphi %s691_s7, %s937_s7   ;;  %s653_s6 = sphi %s689_s6, %s936_s6  }
   0x7   : > { %s29_s14 = sadd.s32 1, %s669_s10  ;;  %s38_s15 = sadd.s32 1, %s661_s8 }
   0x8   : > { %p31_p0 = scmp.ge.s32.totalorder %s29_s14, 5  ;;  %p45_p1 = scmp.ne.s32.totalorder %s661_s8, %s657_s7 }
   0x9   : > { %p46_p2 = scmp.eq.s32.totalorder %s673_s11, 0  ;;  %p51_p3 = scmp.ne.s32.totalorder %s657_s7, %s653_s6 }
   0xa   : > { %s942_s14 = smov (%p31_p0, %s29_s14), 0  ;;  %p52_p5 = scmp.eq.s32.totalorder %s459_s12, 0 }
   0xb   : > { %p730_p4 = por %p46_p2, %p45_p1  ;;  %s33_s17 = ssub.s32 %s669_s10, %s942_s14 }
   0xc   : > { %p77_p6 = scmp.eq.s32.totalorder %s459_s12, 4  ;;  %p36_p7 = scmp.eq.s32.totalorder %s33_s17, 0 }
   0xd   : > { %p736_p8 = por %p52_p5, %p51_p3  ;;  %p83_p10 = scmp.eq.s32.totalorder %s460_s13, 4 }
   0xe   : > { %p740_p9 = por %p77_p6, %p45_p1  ;;  %p497_p12 = scmp.lt.s32.totalorder %s673_s11, 5 }
   0xf   : > { %s745_s20 = scalar_select %p36_p7, %s661_s8, %s38_s15  }
  0x10   : > { %p747_p11 = por %p83_p10, %p51_p3  ;;  %s103_s22 = sand.u32 1, %s661_s8  }
  0x11   : > { %s482_s23 = smul.u32 48, %s103_s22  ;;  %p756_p13 = pnand %p497_p12, %p730_p4 }
  0x12   : > { %s483_s24 = smul.u32 768, %s669_s10  ;;  %p464_p0 = scmp.ge.s32.totalorder %s673_s11, 1 }
  0x13   : > { %s107_s29 = scalar_lea.vmem [#allocation2], %s482_s23  ;;  %s104_s2 = scalar_lea.sflag [#allocation3], %s103_s22 }
  0x14   : > { %s115_s28 = scalar_lea.hbm %s913_s0, %s483_s24  ;;  %s116_s30 = sshll.u32 %s107_s29, 4  ;;  %s117_s30 = int_to_ptr.vmem [resolvable:$true] %s116_s30 }
  0x15   : > { %p567_p1 = pneg %p756_p13  ;;  %s578_s3 = scalar_lea.vmem %s117_s30, 768 }
  0x16   : > { %p579_p2 = scmp.ne.s32.totalorder %s117_s30, %s578_s3  ;;  %s675_s4 = smov [#allocation2]  }
  0x17   : > { %s583_s5 = sshll.u32 %s675_s4, 4  ;;  %s584_s5 = int_to_ptr.vmem [resolvable:$false] %s583_s5 }
  0x18   : > { %p581_p3 = pnand %p579_p2, %p567_p1  ;;  %s585_s12 = scalar_lea.vmem %s584_s5, 1536 }
  0x19   : > { %p586_p4 = scmp.lt.s32.totalorder %s117_s30, %s584_s5  ;;  %p587_p6 = scmp.lt.s32.totalorder %s585_s12, %s578_s3 }
  0x1a   : > { %p582_p5 = pneg %p581_p3 }
  0x1b   : > { %p588_p7 = por %p587_p6, %p586_p4 }
  0x1d   : > { %p589_p10 = pnand %p588_p7, %p582_p5 }
  0x1f   : > { %592 = shalt.err (!%p589_p10)
}
  0x20   : > { %s676_s13 = smov 256   ;;  %s677_s15 = smov 16  }
  0x21   : > { %492 = dma.hbm_to_vmem [thread:$0]  (!%p756_p13), %s115_s28, 768, %s117_s30, %s104_s2, %s676_s13, %s676_s13, %s677_s15  }
  0x22   : > { %p124_p12 = scmp.lt.s32.totalorder %s673_s11, 6 }
  0x24   : > { %p125_p1 = pnand %p464_p0, %p124_p12 }
  0x25   : > { %s772_s16 = sand.u32 (!%p125_p1), 1, %s657_s7  }
  0x26   : > { %128 = sbr.rel (%p125_p1) target bundleno = 157 (0x9d), region = 24  ;;  %s131_s22 = scalar_lea.sflag (!%p125_p1), [#allocation3], %s772_s16 }
  0x27   : > { %s484_s17 = smul.u32 (!%p125_p1), 48, %s772_s16 }
  0x29   : > { %s134_s23 = scalar_lea.vmem (!%p125_p1), [#allocation2], %s484_s17 }
  0x2b   : > { %644 = dma.done.wait (%p736_p8), %s131_s22, 768  }
  0x2c   : > { %646 = vsyncadd (%p736_p8), %s131_s22, 4294966528  ;;  %vm162_vm0 = vcmask 1042432   ;;  %v156_v0 = vld [vmem:[%s134_s23] sm:$0xff]  ;;  %v157_v1 = vld [vmem:[%s134_s23 + $0x8] sm:$0xff]  ;;  %vm341_vm1 = vcmask 1042434   ;;  %s465_s18 = sshll.u32 %s772_s16, 3 }
  0x2d   : > { %v160_v2 = vld [vmem:[%s134_s23 + $0x20] sm:$0x7]  ;;  %v161_v3 = vld [vmem:[%s134_s23 + $0x28] sm:$0x7]  ;;  %v158_v4 = vld [vmem:[%s134_s23 + $0x10] sm:$0xff]  ;;  %vm344_vm3 = vcmask 1046534  }
  0x2e   : > { %v159_v5 = vld [vmem:[%s134_s23 + $0x18] sm:$0xff]  ;;  %v163_v6 = vsel %vm162_vm0, %v160_v2, -inf  ;;  %v172_v7 = vsel %vm162_vm0, %v161_v3, -inf  ;;  %vm342_vm2 = vsmask.f32 2304  ;;  %vm249_vm7 = vcmask 1040384  }
  0x2f   : > { %v164_v8 = vmax.f32 %v156_v0, %v163_v6  ;;  %v173_v9 = vmax.f32 %v157_v1, %v172_v7  ;;  %vm345_vm4 = vsmask.f32 6400  ;;  %vm786_vm5 = vmand %vm341_vm1, %vm342_vm2  ;;  %vm250_vm8 = vsmask.f32 256  ;;  %s801_s24 = scalar_lea.vmem [#allocation5], %s465_s18  ;;  %s481_s25 = sshll.u32 %s665_s9, 7 }
  0x30   : > { %vm791_vm6 = vmand %vm344_vm3, %vm345_vm4  ;;  %vm353_vm10 = vsmask.f32 7946  ;;  %vm355_vm11 = vsmask.f32 7962  ;;  %vm315_vm13 = vcmask 1041409   ;;  %vm318_vm15 = vcmask 1045509   ;;  %s871_s29 = scalar_lea.hbm %s914_s1, %s481_s25 }
  0x31   : > { %v165_v10 = vmax.f32 %v164_v8, %v158_v4  ;;  %v174_v11 = vmax.f32 %v173_v9, %v159_v5  ;;  %vm347_vm9 = vmor %vm791_vm6, %vm786_vm5  ;;  %vm316_vm14 = vsmask.f32 1280  ;;  %vm252_vm5 = vcmask 1044484   ;;  %s377_s26 = sshll.u32 %s801_s24, 4  ;;  %s362_s30 = scalar_lea.sflag [#allocation4], %s772_s16  ;;  %s378_s26 = int_to_ptr.vmem [resolvable:$true] %s377_s26 }
  0x32   : > { %vm809_vm12 = vmand %vm249_vm7, %vm250_vm8  ;;  %vm253_vm6 = vsmask.f32 4352  ;;  %s593_s2 = scalar_lea.vmem %s378_s26, 128  ;;  %s678_s9 = smov [#allocation5]  }
  0x33   : > { %v166_v12 = vrot.slane %v165_v10, 4  ;;  %v175_v13 = vrot.slane %v174_v11, 4  ;;  %vm816_vm2 = vmand %vm341_vm1, %vm353_vm10  ;;  %p594_p8 = scmp.ne.s32.totalorder %s378_s26, %s593_s2  ;;  %s597_s3 = sshll.u32 %s678_s9, 4  ;;  %s598_s3 = int_to_ptr.vmem [resolvable:$false] %s597_s3 }
  0x34   : > { %vm821_vm4 = vmand %vm344_vm3, %vm355_vm11  ;;  %vm333_vm11 = vsmask.f32 7942  ;;  %s599_s4 = scalar_lea.vmem %s598_s3, 256  ;;  %p600_p2 = scmp.lt.s32.totalorder %s378_s26, %s598_s3 }
  0x35   : > { %v167_v14 = vmax.f32 %v165_v10, %v166_v12  ;;  %v176_v15 = vmax.f32 %v174_v11, %v175_v13  ;;  %v348_v13 = vld [vmem:[%s801_s24] sm:$0x44]  ;;  %vm826_vm8 = vmand %vm315_vm13, %vm316_vm14  ;;  %p595_p13 = pnand %p594_p8, %p740_p9  ;;  %p601_p3 = scmp.lt.s32.totalorder %s599_s4, %s593_s2 }
  0x36   : > { %vm357_vm3 = vmor %vm821_vm4, %vm816_vm2  ;;  %vm272_vm2 = vsmask.f32 7938  ;;  %vm274_vm4 = vsmask.f32 7954 }
  0x37   : > { %v168_v16 = vrot.slane %v167_v14, 2  ;;  %v177_v17 = vrot.slane %v176_v15, 2  ;;  %p596_p0 = pneg %p595_p13  ;;  %p602_p5 = por %p601_p3, %p600_p2 }
  0x39   : > { %v169_v18 = vmax.f32 %v167_v14, %v168_v16  ;;  %v178_v19 = vmax.f32 %v176_v15, %v177_v17  ;;  %p603_p4 = pnand %p602_p5, %p596_p0 }
  0x3b   : > { %v170_v20 = vrot.slane %v169_v18, 1  ;;  %v179_v21 = vrot.slane %v178_v19, 1 }
  0x3d   : > { %v171_v22 = vmax.f32 %v169_v18, %v170_v20  ;;  %v180_v23 = vmax.f32 %v178_v19, %v179_v21 }
  0x3f   : > { %v181_v24 = vsub.f32 %v156_v0, %v171_v22  ;;  %v182_v25 = vsub.f32 %v157_v1, %v180_v23  ;;  %v183_v26 = vsub.f32 %v158_v4, %v171_v22  ;;  %v184_v27 = vsub.f32 %v159_v5, %v180_v23 }
  0x40   : > { %v185_v28 = vsub.f32 %v160_v2, %v171_v22  ;;  %v186_v29 = vsub.f32 %v161_v3, %v180_v23 }
  0x41   : > { %v187_v30 = vmul.f32 1.442695, %v181_v24  ;;  %v189_v31 = vmul.f32 1.442695, %v182_v25  ;;  %v191_v32 = vmul.f32 1.442695, %v183_v26 }
  0x42   : > { %v193_v33 = vmul.f32 1.442695, %v184_v27  ;;  %v195_v34 = vmul.f32 1.442695, %v185_v28  ;;  %v197_v35 = vmul.f32 1.442695, %v186_v29 }
  0x43   : > { %549 = vpow2.f32 %v187_v30 }
  0x44   : > { %551 = vpow2.f32 %v189_v31 }
  0x45   : > { %553 = vpow2.f32 %v191_v32 }
  0x46   : > { %555 = vpow2.f32 %v193_v33 }
  0x47   : > { %557 = vpow2.f32 %v195_v34 }
  0x48   : > { %559 = vpow2.f32 %v197_v35 }
  0x50   : > { %v550_v36 = vpop.eup %549 }
  0x51   : > { %v552_v37 = vpop.eup %551 }
  0x52   : > { %v554_v38 = vpop.eup %553 }
  0x53   : > { %v556_v39 = vpop.eup %555  ;;  %v199_v40 = vadd.f32 %v554_v38, %v550_v36 }
  0x54   : > { %v558_v41 = vpop.eup %557  ;;  %v208_v42 = vadd.f32 %v556_v39, %v552_v37 }
  0x55   : > { %v560_v43 = vpop.eup %559  ;;  %v200_v44 = vsel %vm162_vm0, %v558_v41, 0.0 }
  0x56   : > { %v201_v45 = vadd.f32 %v200_v44, %v199_v40  ;;  %v209_v46 = vsel %vm162_vm0, %v560_v43, 0.0 }
  0x57   : > { %v210_v47 = vadd.f32 %v209_v46, %v208_v42 }
  0x58   : > { %v202_v48 = vrot.slane %v201_v45, 4 }
  0x59   : > { %v211_v49 = vrot.slane %v210_v47, 4 }
  0x5a   : > { %v203_v50 = vadd.f32 %v202_v48, %v201_v45  ;;  %v322_v45 = vld [vmem:[%s801_s24] sm:$0x22] }
  0x5b   : > { %v212_v51 = vadd.f32 %v211_v49, %v210_v47 }
  0x5c   : > { %v204_v52 = vrot.slane %v203_v50, 2 }
  0x5d   : > { %v213_v53 = vrot.slane %v212_v51, 2 }
  0x5e   : > { %v205_v54 = vadd.f32 %v204_v52, %v203_v50 }
  0x5f   : > { %v214_v55 = vadd.f32 %v213_v53, %v212_v51  ;;  %v256_v51 = vld [vmem:[%s801_s24] sm:$0x11] }
  0x60   : > { %v206_v56 = vrot.slane %v205_v54, 1 }
  0x61   : > { %v215_v57 = vrot.slane %v214_v55, 1 }
  0x62   : > { %v207_v58 = vadd.f32 %v206_v56, %v205_v54 }
  0x63   : > { %v216_v59 = vadd.f32 %v215_v57, %v214_v55 }
  0x64   : > { %561 = vrcp.f32 %v207_v58 }
  0x65   : > { %563 = vrcp.f32 %v216_v59 }
  0x71   : > { %v562_v60 = vpop.eup %561 }
  0x72   : > { %v564_v62 = vpop.eup %563  ;;  %v219_v63 = vmul.f32 %v562_v60, %v550_v36  ;;  %v221_v0 = vmul.f32 %v562_v60, %v554_v38  ;;  %v223_v1 = vmul.f32 %v562_v60, %v558_v41 }
  0x73   : > { %v220_v3 = vmul.f32 %v564_v62, %v552_v37  ;;  %v222_v4 = vmul.f32 %v564_v62, %v556_v39  ;;  %v224_v5 = vmul.f32 %v564_v62, %v560_v43 }
  0x74   : > { %v225_v6 = vsel %vm162_vm0, %v221_v0, 0.0  ;;  %v282_v7 = vrot.slane %v221_v0, 1  ;;  %v288_v8 = vrot.slane %v221_v0, 2  ;;  %v296_v16 = vrot.slane %v223_v1, 3 }
  0x75   : > { %v226_v9 = vadd.f32 %v225_v6, %v219_v63  ;;  %v233_v10 = vsel %vm162_vm0, %v222_v4, 0.0  ;;  %v283_v11 = vrot.slane %v222_v4, 1  ;;  %v289_v12 = vrot.slane %v222_v4, 2 }
  0x76   : > { %v234_v14 = vadd.f32 %v233_v10, %v220_v3  ;;  %v286_v15 = vadd.f32 %v282_v7, %v221_v0  ;;  %v804_v17 = vpack.c.bf16 %v222_v4, %v221_v0  ;;  %v297_v20 = vrot.slane %v224_v5, 3 }
  0x77   : > { %v227_v18 = vrot.slane %v226_v9, 4  ;;  %v287_v19 = vadd.f32 %v283_v11, %v222_v4  ;;  %vm319_vm0 = vsmask.f32 5376  ;;  %v478_v33 = vpack.c.bf16 %v224_v5, %v223_v1 }
  0x78   : > { %v235_v21 = vrot.slane %v234_v14, 4  ;;  %v292_v22 = vadd.f32 %v288_v8, %v286_v15  ;;  %v349_v23 = vsel %vm347_vm9, %v804_v17, %v348_v13  ;;  %vm831_vm1 = vmand %vm318_vm15, %vm319_vm0  ;;  %vm335_vm0 = vsmask.f32 7958 }
  0x79   : > { %v228_v24 = vadd.f32 %v227_v18, %v226_v9  ;;  %v293_v26 = vadd.f32 %v289_v12, %v287_v19  ;;  %350 = vst [vmem:[%s801_s24] sm:$0x44] %v349_v23  ;;  %v351_v39 = vrot.slane %v478_v33, 6  ;;  %vm840_vm9 = vmand %vm252_vm5, %vm253_vm6  ;;  %v267_v55 = vshll.u32 %v478_v33, 16 }
  0x7a   : > { %v236_v27 = vadd.f32 %v235_v21, %v234_v14  ;;  %v300_v28 = vadd.f32 %v296_v16, %v292_v22  ;;  %vm321_vm10 = vmor %vm831_vm1, %vm826_vm8 }
  0x7b   : > { %v229_v30 = vrot.slane %v228_v24, 2  ;;  %v301_v31 = vadd.f32 %v297_v20, %v293_v26  ;;  %vm255_vm14 = vmor %vm840_vm9, %vm809_vm12  ;;  %v468_v56 = vrot.slane %v267_v55, 9 }
  0x7c   : > { %v237_v34 = vrot.slane %v236_v27, 2  ;;  %vm334_vm6 = vmand %vm315_vm13, %vm333_vm11 }
  0x7d   : > { %v230_v36 = vadd.f32 %v229_v30, %v228_v24  ;;  %v479_v37 = vpack.c.bf16 %v301_v31, %v300_v28  ;;  %vm336_vm8 = vmand %vm318_vm15, %vm335_vm0 }
  0x7e   : > { %v238_v40 = vadd.f32 %v237_v34, %v236_v27  ;;  %vm273_vm12 = vmand %vm249_vm7, %vm272_vm2 }
  0x7f   : > { %v231_v41 = vrot.slane %v230_v36, 1  ;;  %v310_v43 = vshrl.u32 %v479_v37, 16  ;;  %vm275_vm1 = vmand %vm252_vm5, %vm274_vm4 }
  0x80   : > { %v239_v44 = vrot.slane %v238_v40, 1  ;;  %v358_v46 = vld [vmem:[%s801_s24] sm:$0x44]  ;;  %vm276_vm9 = vmor %vm275_vm1, %vm273_vm12 }
  0x81   : > { %v232_v47 = vadd.f32 %v231_v41, %v230_v36  ;;  %v470_v48 = vrot.slane %v310_v43, 9  ;;  %v359_v49 = vsel %vm357_vm3, %v351_v39, %v358_v46  ;;  %vm337_vm3 = vmor %vm336_vm8, %vm334_vm6 }
  0x82   : > { %v240_v50 = vadd.f32 %v239_v44, %v238_v40  ;;  %360 = vst [vmem:[%s801_s24] sm:$0x44] %v359_v49 }
  0x83   : > { %v323_v52 = vsel %vm321_vm10, %v470_v48, %v322_v45 }
  0x84   : > { %v477_v53 = vpack.c.bf16 %v240_v50, %v232_v47  ;;  %324 = vst [vmem:[%s801_s24] sm:$0x22] %v323_v52 }
  0x86   : > { %v257_v54 = vsel %vm255_vm14, %v477_v53, %v256_v51 }
  0x87   : > { %258 = vst [vmem:[%s801_s24] sm:$0x11] %v257_v54 }
  0x8b   : > { %v338_v57 = vld [vmem:[%s801_s24] sm:$0x22] }
  0x8c   : > { %v339_v58 = vsel %vm337_vm3, %v804_v17, %v338_v57 }
  0x8d   : > { %340 = vst [vmem:[%s801_s24] sm:$0x22] %v339_v58 }
  0x8e   : > { %v277_v59 = vld [vmem:[%s801_s24] sm:$0x11] }
  0x8f   : > { %v278_v60 = vsel %vm276_vm9, %v468_v56, %v277_v59 }
  0x90   : > { %279 = vst [vmem:[%s801_s24] sm:$0x11] %v278_v60 }
  0x91   : > { %606 = shalt.err (!%p603_p4)
}
  0x92   : > { %s607_s5 = scalar_lea.hbm %s871_s29, 128  ;;  %s611_s15 = scalar_lea.hbm %s914_s1, 640 }
  0x93   : > { %p608_p6 = scmp.ne.s32.totalorder %s871_s29, %s607_s5  ;;  %p612_p12 = scmp.lt.s32.totalorder %s871_s29, %s914_s1 }
  0x94   : > { %p613_p1 = scmp.lt.s32.totalorder %s611_s15, %s607_s5 }
  0x95   : > { %p609_p7 = pnand %p608_p6, %p740_p9 }
  0x96   : > { %p614_p8 = por %p613_p1, %p612_p12 }
  0x97   : > { %p610_p10 = pneg %p609_p7 }
  0x99   : > { %p615_p13 = pnand %p614_p8, %p610_p10 }
  0x9b   : > { %618 = shalt.err (!%p615_p13)
}
  0x9c   : > { %487 = dma.vmem_to_hbm [thread:$0]  (%p740_p9), %s378_s26, 128, %s871_s29, %s362_s30  }
  0x9d PF: > { %p498_p0 = scmp.ge.s32.totalorder %s673_s11, 2  ;;  %s389_s22 = sand.u32 1, %s653_s6  }
  0x9e   : > { %s390_s23 = scalar_lea.sflag [#allocation4], %s389_s22 }
  0x9f   : > { %p494_p2 = pnand %p498_p0, %p747_p11 }
  0xa1   : > { %p495_p3 = pneg %p494_p2 }
  0xa3   : > { %648 = dma.done.wait (%p495_p3), %s390_s23, 128  }
  0xa4   : > { %650 = vsyncadd (%p495_p3), %s390_s23, 4294967168  ;;  %s17_s11 = sadd.s32 1, %s673_s11   ;;  %s936_s6 = smov %s657_s7 }
  0xa5   : > { %p14_p5 = scmp.ge.s32.totalorder %s17_s11, 7   ;;  %s937_s7 = smov %s661_s8 }
  0xa6   : > { %s938_s8 = smov %s745_s20  ;;  %s939_s9 = smov %s669_s10 }
  0xa7   : > { %s940_s10 = smov %s942_s14  ;;  %16 = sbr.rel (!%p14_p5) target bundleno = 6 (0x6), region = 69 }
  0xac   :  { %395 = vsyncpa [#allocation3], 1 }
  0xad   :  { %397 = vsyncpa [#allocation3 + $0x1], 1 }
  0xae   :  { %398 = vsyncpa [#allocation4], 1 }
  0xaf   :  { %400 = vsyncpa [#allocation4 + $0x1], 1 }

</bundles_post_ra>
